<compile_context>
chip_gen: v7x
topology: tpu7x:2x2x1
jax: 0.10.0
libtpu: 0.0.40
codegen_flags: <defaults>
</compile_context>

<pallas_src>
import jax
import jax.numpy as jnp
from jax.experimental import pallas as pl
from jax.experimental.pallas import tpu as pltpu

LANES = 128
SUBLANES = 8


def _round_up(x, m):
    return ((x + m - 1) // m) * m


def _linear_kernel(x_ref, w_ref, b_ref, o_ref):
    # x_ref: (TM, K) f32, w_ref: (K, N) f32, b_ref: (1, N) f32, o_ref: (TM, N) f32.
    # Cast matmul operands to bf16 in-kernel (x stays f32 in HBM -> single
    # 4 B/elem read); accumulate and add bias in f32.
    acc = jnp.dot(
        x_ref[...].astype(jnp.bfloat16),
        w_ref[...].astype(jnp.bfloat16),
        preferred_element_type=jnp.float32,
    )
    o_ref[...] = acc + b_ref[...]


def linear_pallas(x_2d, w, b, *, tm=8192):
    """x_2d: (M, K) f32, w: (K, N) f32, b: (N,) f32 -> (M, N) f32."""
    M, K = x_2d.shape
    Kw, N = w.shape
    assert K == Kw
    x_2d = x_2d.astype(jnp.float32)
    w = w.astype(jnp.float32)
    b = b.astype(jnp.float32)

    # Lane-dense output path: fold G = 128 // N consecutive rows into one
    # 128-lane output row using a block-diagonal weight.  (M, N) row-major is
    # byte-identical to (M // G, 128), so the reshapes below are free.
    use_dense = (N < LANES) and (LANES % N == 0) and (M % (LANES // N) == 0) and (M > 0)
    if use_dense:
        G = LANES // N
        k_in = G * K
        # Block-diagonal weight: w repeated G times on the diagonal (zeros add
        # exactly, so numerics match the small matmul).
        idx = jnp.arange(G)
        w_in = jnp.zeros((G, K, G, N), jnp.float32).at[idx, :, idx, :].set(w)
        w_in = w_in.reshape(k_in, LANES)
        b_in = jnp.tile(b, G).reshape(1, LANES)
        x_in = x_2d.reshape(M // G, k_in)        # contiguous -> metadata-only
        m_rows, n_out = M // G, LANES
    else:
        G = 1
        x_in, w_in, b_in = x_2d, w, b.reshape(1, N)
        m_rows, k_in, n_out = M, K, N

    # Row tile: `tm` counts *original* rows; keep the block first dim a
    # multiple of 8 and never larger than the sublane-aligned problem.
    tm_rows = min(
        _round_up(max(tm // G, SUBLANES), SUBLANES),
        _round_up(m_rows, SUBLANES),
    )
    grid = (pl.cdiv(m_rows, tm_rows),)

    out = pl.pallas_call(
        _linear_kernel,
        out_shape=jax.ShapeDtypeStruct((m_rows, n_out), jnp.float32),
        grid=grid,
        in_specs=[
            # x: streamed row tile (double-buffered by the Pallas pipeline).
            pl.BlockSpec((tm_rows, k_in), lambda i: (i, 0)),
            # w, b: constant block index -> VMEM-resident across grid steps.
            pl.BlockSpec((k_in, n_out), lambda i: (0, 0)),
            pl.BlockSpec((1, n_out), lambda i: (0, 0)),
        ],
        out_specs=pl.BlockSpec((tm_rows, n_out), lambda i: (i, 0)),
        compiler_params=pltpu.CompilerParams(
            # Independent M tiles -> parallel (lets v7x shard across its 2 TCs).
            dimension_semantics=("parallel",),
            # Explicit scoped-VMEM budget: safe on v5e (16 MiB default) and
            # well under v7x's 64 MiB physical per-TC VMEM.
            vmem_limit_bytes=32 * 1024 * 1024,
        ),
    )(x_in, w_in, b_in)

    return out.reshape(M, N) if use_dense else out


class CRFModelPallas:
    """Pallas equivalent of CRFModel.forward (emissions = Linear(68, num_tags)(x))."""

    def __init__(self, num_tags, key):
        in_features = 68
        kw, kb = jax.random.split(key)
        # Mimic nn.Linear's uniform(-1/sqrt(fan_in), +1/sqrt(fan_in)) init.
        bound = 1.0 / (in_features ** 0.5)
        # Stored as (in_features, num_tags) = transpose of PyTorch's layout.
        self.w = jax.random.uniform(
            kw, (in_features, num_tags), jnp.float32, -bound, bound
        )
        self.b = jax.random.uniform(kb, (num_tags,), jnp.float32, -bound, bound)
        # TODO(synk): the CRF submodule (transition params, viterbi decode /
        # log-likelihood) is constructed in __init__ but never used in
        # forward(), so it is intentionally not implemented here.

    def __call__(self, x):
        # x: (batch, seq, 68) -> emissions: (batch, seq, num_tags)
        batch, seq, feat = x.shape
        out_2d = linear_pallas(x.reshape(batch * seq, feat), self.w, self.b)
        return out_2d.reshape(batch, seq, -1)


if __name__ == "__main__":
    key = jax.random.PRNGKey(0)
    k_param, k_x1, k_x2 = jax.random.split(key, 3)

    num_tags = 8          # tag_to_idx is empty in the snippet; pick a small tag set
    feat = 68
    model = CRFModelPallas(num_tags, k_param)

    def references(x3d):
        m = x3d.reshape(-1, feat)
        # Same numerics the kernel uses (bf16 operands, f32 accumulate).
        r_bf16 = jnp.dot(
            m.astype(jnp.bfloat16),
            model.w.astype(jnp.bfloat16),
            preferred_element_type=jnp.float32,
        ) + model.b
        # Full-f32 PyTorch-equivalent reference (loose tol: bf16 operand rounding).
        r_f32 = m @ model.w + model.b
        shape = (*x3d.shape[:2], num_tags)
        return r_bf16.reshape(shape), r_f32.reshape(shape)

    # Case 1: M * num_tags divisible by 128 -> lane-dense (128-wide) output path.
    x1 = jax.random.normal(k_x1, (2, 64, feat), jnp.float32)
    e1 = jax.block_until_ready(model(x1))
    assert e1.shape == (2, 64, num_tags)
    r1_bf16, r1_f32 = references(x1)
    assert jnp.allclose(e1, r1_bf16, atol=2e-3, rtol=2e-3)
    assert jnp.allclose(e1, r1_f32, atol=3e-2, rtol=3e-2)

    # Case 2: ragged M (not a multiple of 128 // num_tags) -> narrow-output fallback.
    x2 = jax.random.normal(k_x2, (2, 7, feat), jnp.float32)
    e2 = jax.block_until_ready(model(x2))
    assert e2.shape == (2, 7, num_tags)
    r2_bf16, r2_f32 = references(x2)
    assert jnp.allclose(e2, r2_bf16, atol=2e-3, rtol=2e-3)
    assert jnp.allclose(e2, r2_f32, atol=3e-2, rtol=3e-2)

    print("KERNEL_OK")
</pallas_src>

<mosaic_0001>
module attributes {stable_mosaic.version = 11 : i64} {
  func.func @_linear_kernel(%arg0: i32, %arg1: memref<8x1088xf32, #tpu.memory_space<vmem>>, %arg2: memref<1088x128xf32, #tpu.memory_space<vmem>>, %arg3: memref<1x128xf32, #tpu.memory_space<vmem>>, %arg4: memref<8x128xf32, #tpu.memory_space<vmem>>) attributes {dimension_semantics = [#tpu.dimension_semantics<parallel>], iteration_bounds = array<i64: 1>, scalar_prefetch = 0 : i64, scratch_operands = 0 : i64, tpu.core_type = #tpu.core_type<tc>, window_params = [{transform_indices = @transform_0, window_bounds = array<i64: 8, 1088>}, {pipeline_mode = #tpu.pipeline_mode<synchronous>, transform_indices = @transform_1, window_bounds = array<i64: 1088, 128>}, {pipeline_mode = #tpu.pipeline_mode<synchronous>, transform_indices = @transform_2, window_bounds = array<i64: 1, 128>}, {transform_indices = @transform_3, window_bounds = array<i64: 8, 128>}]} {
    %c0 = arith.constant 0 : index
    %c0_0 = arith.constant 0 : index
    %0 = vector.load %arg1[%c0, %c0_0] : memref<8x1088xf32, #tpu.memory_space<vmem>>, vector<8x1088xf32>
    %1 = arith.truncf %0 : vector<8x1088xf32> to vector<8x1088xbf16>
    %c0_1 = arith.constant 0 : index
    %c0_2 = arith.constant 0 : index
    %2 = vector.load %arg2[%c0_1, %c0_2] : memref<1088x128xf32, #tpu.memory_space<vmem>>, vector<1088x128xf32>
    %3 = arith.truncf %2 : vector<1088x128xf32> to vector<1088x128xbf16>
    %cst = arith.constant dense<0.000000e+00> : vector<8x128xf32>
    %4 = tpu.matmul %1, %3, %cst {dimension_numbers = #tpu.dot_dimension_numbers<[1], [0], [0], [1], [0, 0, 1, 1], [], []>} : vector<8x1088xbf16>, vector<1088x128xbf16>, vector<8x128xf32> -> vector<8x128xf32>
    %c0_3 = arith.constant 0 : index
    %c0_4 = arith.constant 0 : index
    %5 = vector.load %arg3[%c0_3, %c0_4] : memref<1x128xf32, #tpu.memory_space<vmem>>, vector<1x128xf32>
    %6 = vector.broadcast %5 : vector<1x128xf32> to vector<8x128xf32>
    %7 = arith.addf %4, %6 : vector<8x128xf32>
    %c0_5 = arith.constant 0 : index
    %c0_6 = arith.constant 0 : index
    %8 = vector.load %arg4[%c0_5, %c0_6] : memref<8x128xf32, #tpu.memory_space<vmem>>, vector<8x128xf32>
    tpu.vector_store %arg4[%c0_5, %c0_6], %7 {strides = array<i32>} : memref<8x128xf32, #tpu.memory_space<vmem>>, vector<8x128xf32>,
    return
  }
  func.func @transform_0(%arg0: i32) -> (i32, i32) {
    %c0_i32 = arith.constant 0 : i32
    %c0_i32_0 = arith.constant 0 : i32
    return %arg0, %c0_i32 : i32, i32
  }
  func.func @transform_1(%arg0: i32) -> (i32, i32) {
    %c0_i32 = arith.constant 0 : i32
    %c0_i32_0 = arith.constant 0 : i32
    %c0_i32_1 = arith.constant 0 : i32
    return %c0_i32, %c0_i32_0 : i32, i32
  }
  func.func @transform_2(%arg0: i32) -> (i32, i32) {
    %c0_i32 = arith.constant 0 : i32
    %c0_i32_0 = arith.constant 0 : i32
    %c0_i32_1 = arith.constant 0 : i32
    return %c0_i32, %c0_i32_0 : i32, i32
  }
  func.func @transform_3(%arg0: i32) -> (i32, i32) {
    %c0_i32 = arith.constant 0 : i32
    %c0_i32_0 = arith.constant 0 : i32
    return %arg0, %c0_i32 : i32, i32
  }
}

</mosaic_0001>

<bundles_post_ra>
// kernel: tpu_custom_call.1
= control target key start
LH: loop header
LB: loop body
LE: loop exit
PB: predicated region body
PF: predicated region fallthrough
CT: control target
= control target key end

     0   :  { %8 = vsyncpa [#allocation3], 0  ;;  %s751_s0 = inlined_call_operand.hbm [shape: f32[8,1088], index: 0, kind: input, shape index: {}]   ;;  %s752_s1 = inlined_call_operand.hbm [shape: f32[1088,128], index: 1, kind: input, shape index: {}]   ;;  %s753_s2 = inlined_call_operand.vmem [shape: f32[1,128], index: 2, kind: input, shape index: {}]   ;;  %s754_s3 = inlined_call_operand.hbm [shape: f32[8,128], index: 3, kind: output, shape index: {}]  }
   0x1   :  { %9 = vsyncpa [#allocation6], 0 }
   0x2   :  { %10 = vsyncpa [#allocation4], 0  ;;  %s678_s12 = smov [#allocation2]   ;;  %s679_s14 = smov [#allocation5]  }
   0x3   :  { %s17_s13 = sshll.u32 %s678_s12, 4  ;;  %s26_s15 = sshll.u32 %s679_s14, 4  ;;  %s18_s13 = int_to_ptr.vmem [resolvable:$true] %s17_s13  ;;  %s705_s15 = int_to_ptr.vmem [resolvable:$true] %s26_s15 }
   0x4   :  { %s606_s18 = scalar_lea.hbm %s751_s0, 1152 }
   0x5   :  { %p607_p0 = scmp.ne.s32.totalorder %s751_s0, %s606_s18  ;;  %p610_p1 = scmp.lt.u32.totalorder %s606_s18, %s751_s0 }
   0x7   :  { %p612_p2 = pnand %p610_p1, %p607_p0 }
   0x9   :  { %615 = shalt.err (!%p612_p2)
}
   0xa   :  { %s616_s23 = scalar_lea.vmem %s18_s13, 1152  ;;  %p621_p4 = scmp.lt.s32.totalorder %s18_s13, %s18_s13 }
   0xb   :  { %p617_p3 = scmp.ne.s32.totalorder %s18_s13, %s616_s23  ;;  %p622_p5 = scmp.lt.s32.totalorder %s616_s23, %s616_s23 }
   0xd   :  { %p623_p6 = por %p622_p5, %p621_p4 }
   0xf   :  { %p624_p7 = pnand %p623_p6, %p617_p3 }
  0x11   :  { %627 = shalt.err (!%p624_p7)
}
  0x12   :  { %20 = dma.hbm_to_vmem [thread:$0]  %s751_s0, 1152, %s18_s13, [#allocation3]  }
  0x13   :  { %s628_s28 = scalar_lea.hbm %s752_s1, 17408 }
  0x14   :  { %p629_p8 = scmp.ne.s32.totalorder %s752_s1, %s628_s28  ;;  %p632_p9 = scmp.lt.u32.totalorder %s628_s28, %s752_s1 }
  0x16   :  { %p634_p10 = pnand %p632_p9, %p629_p8 }
  0x18   :  { %637 = shalt.err (!%p634_p10)
}
  0x19   :  { %s638_s6 = scalar_lea.vmem %s705_s15, 17408  ;;  %p643_p12 = scmp.lt.s32.totalorder %s705_s15, %s705_s15 }
  0x1a   :  { %p639_p11 = scmp.ne.s32.totalorder %s705_s15, %s638_s6  ;;  %p644_p13 = scmp.lt.s32.totalorder %s638_s6, %s638_s6 }
  0x1c   :  { %p645_p0 = por %p644_p13, %p643_p12 }
  0x1e   :  { %p646_p1 = pnand %p645_p0, %p639_p11 }
  0x20   :  { %649 = shalt.err (!%p646_p1)
}
  0x21   :  { %s680_s0 = smov 128   ;;  %s681_s7 = smov 8  }
  0x22   :  { %32 = dma.hbm_to_vmem [thread:$0]  %s752_s1, 17408, %s705_s15, [#allocation6], %s680_s0, %s680_s0, %s681_s7  }
  0x23   :  { %672 = dma.done.wait [#allocation3], 1152  }
  0x24   :  { %673 = vsyncadd [#allocation3], 4294966144 }
  0x25   :  { %674 = dma.done.wait [#allocation6], 17408  }
  0x26   :  { %675 = vsyncadd [#allocation6], 4294949888  ;;  %v76_v0 = vld [vmem:[#allocation5 + $0x80] sm:$0xff]  ;;  %v77_v1 = vld [vmem:[#allocation5 + $0x88] sm:$0xff]  ;;  %vm683_vm0 = vmmov 0   ;;  %vm271_vm1 = vcmask 523264  }
  0x27   :  { %v60_v2 = vld [vmem:[#allocation5] sm:$0xff]  ;;  %v204_v3 = vpack.c.bf16 %v77_v1, %v76_v0  ;;  %v61_v4 = vld [vmem:[#allocation5 + $0x8] sm:$0xff]  ;;  %v78_v11 = vld [vmem:[#allocation5 + $0x90] sm:$0xff] }
  0x28   :  { %v108_v5 = vld [vmem:[#allocation5 + $0x180] sm:$0xff]  ;;  %v109_v6 = vld [vmem:[#allocation5 + $0x188] sm:$0xff]  ;;  %v196_v7 = vpack.c.bf16 %v61_v4, %v60_v2  ;;  %v79_v13 = vld [vmem:[#allocation5 + $0x98] sm:$0xff] }
  0x29   :  { %v220_v8 = vpack.c.bf16 %v109_v6, %v108_v5  ;;  %v92_v9 = vld [vmem:[#allocation5 + $0x100] sm:$0xff]  ;;  %v93_v10 = vld [vmem:[#allocation5 + $0x108] sm:$0xff]  ;;  %494 = vmatprep.subr.bf16.mxu0 %v204_v3  ;;  %v62_v14 = vld [vmem:[#allocation5 + $0x10] sm:$0xff]  ;;  %v205_v16 = vpack.c.bf16 %v79_v13, %v78_v11 }
  0x2a   :  { %v212_v12 = vpack.c.bf16 %v93_v10, %v92_v9  ;;  %v63_v15 = vld [vmem:[#allocation5 + $0x18] sm:$0xff]  ;;  %495 = vmatpush3.bf16.msra.mxu0 %v196_v7  ;;  %v110_v18 = vld [vmem:[#allocation5 + $0x190] sm:$0xff]  ;;  %v80_v23 = vld [vmem:[#allocation5 + $0xa0] sm:$0xff] }
  0x2b   :  { %516 = vmatprep.subr.bf16.mxu1 %v220_v8  ;;  %v197_v17 = vpack.c.bf16 %v63_v15, %v62_v14  ;;  %v111_v19 = vld [vmem:[#allocation5 + $0x198] sm:$0xff]  ;;  %v94_v20 = vld [vmem:[#allocation5 + $0x110] sm:$0xff]  ;;  %v81_v24 = vld [vmem:[#allocation5 + $0xa8] sm:$0xff]  ;;  %496 = vmatprep.subr.bf16.mxu0 %v205_v16 }
  0x2c   :  { %517 = vmatpush3.bf16.msra.mxu1 %v212_v12  ;;  %v221_v21 = vpack.c.bf16 %v111_v19, %v110_v18  ;;  %v95_v22 = vld [vmem:[#allocation5 + $0x118] sm:$0xff]  ;;  %v206_v26 = vpack.c.bf16 %v81_v24, %v80_v23  ;;  %v64_v27 = vld [vmem:[#allocation5 + $0x20] sm:$0xff]  ;;  %v65_v28 = vld [vmem:[#allocation5 + $0x28] sm:$0xff] }
  0x2d   :  { %v213_v25 = vpack.c.bf16 %v95_v22, %v94_v20  ;;  %v112_v29 = vld [vmem:[#allocation5 + $0x1a0] sm:$0xff]  ;;  %v113_v30 = vld [vmem:[#allocation5 + $0x1a8] sm:$0xff]  ;;  %v198_v33 = vpack.c.bf16 %v65_v28, %v64_v27  ;;  %v82_v35 = vld [vmem:[#allocation5 + $0xb0] sm:$0xff] }
  0x2e   :  { %518 = vmatprep.subr.bf16.mxu1 %v221_v21  ;;  %v96_v31 = vld [vmem:[#allocation5 + $0x120] sm:$0xff]  ;;  %v97_v32 = vld [vmem:[#allocation5 + $0x128] sm:$0xff]  ;;  %497 = vmatpush3.bf16.msra.mxu0 %v197_v17  ;;  %v222_v34 = vpack.c.bf16 %v113_v30, %v112_v29  ;;  %v83_v36 = vld [vmem:[#allocation5 + $0xb8] sm:$0xff] }
  0x2f   :  { %v66_v37 = vld [vmem:[#allocation5 + $0x30] sm:$0xff]  ;;  %498 = vmatprep.subr.bf16.mxu0 %v206_v26  ;;  %v214_v38 = vpack.c.bf16 %v97_v32, %v96_v31  ;;  %v207_v39 = vpack.c.bf16 %v83_v36, %v82_v35  ;;  %v67_v40 = vld [vmem:[#allocation5 + $0x38] sm:$0xff]  ;;  %v84_v46 = vld [vmem:[#allocation5 + $0xc0] sm:$0xff] }
  0x30   :  { %519 = vmatpush3.bf16.msra.mxu1 %v213_v25  ;;  %v114_v41 = vld [vmem:[#allocation5 + $0x1b0] sm:$0xff]  ;;  %v115_v42 = vld [vmem:[#allocation5 + $0x1b8] sm:$0xff]  ;;  %v85_v47 = vld [vmem:[#allocation5 + $0xc8] sm:$0xff]  ;;  %v199_v48 = vpack.c.bf16 %v67_v40, %v66_v37 }
  0x31   :  { %520 = vmatprep.subr.bf16.mxu1 %v222_v34  ;;  %v223_v43 = vpack.c.bf16 %v115_v42, %v114_v41  ;;  %v98_v44 = vld [vmem:[#allocation5 + $0x130] sm:$0xff]  ;;  %v99_v45 = vld [vmem:[#allocation5 + $0x138] sm:$0xff]  ;;  %v116_v49 = vld [vmem:[#allocation5 + $0x1c0] sm:$0xff]  ;;  %v208_v52 = vpack.c.bf16 %v85_v47, %v84_v46 }
  0x32   :  { %499 = vmatpush3.bf16.msra.mxu0 %v198_v33  ;;  %v117_v50 = vld [vmem:[#allocation5 + $0x1c8] sm:$0xff]  ;;  %v215_v51 = vpack.c.bf16 %v99_v45, %v98_v44  ;;  %v68_v53 = vld [vmem:[#allocation5 + $0x40] sm:$0xff]  ;;  %v86_v58 = vld [vmem:[#allocation5 + $0xd0] sm:$0xff] }
  0x33   :  { %500 = vmatprep.subr.bf16.mxu0 %v207_v39  ;;  %v69_v54 = vld [vmem:[#allocation5 + $0x48] sm:$0xff]  ;;  %v100_v55 = vld [vmem:[#allocation5 + $0x140] sm:$0xff]  ;;  %v224_v56 = vpack.c.bf16 %v117_v50, %v116_v49  ;;  %v87_v59 = vld [vmem:[#allocation5 + $0xd8] sm:$0xff] }
  0x34   :  { %521 = vmatpush3.bf16.msra.mxu1 %v214_v38  ;;  %v101_v57 = vld [vmem:[#allocation5 + $0x148] sm:$0xff]  ;;  %v118_v60 = vld [vmem:[#allocation5 + $0x1d0] sm:$0xff]  ;;  %v119_v61 = vld [vmem:[#allocation5 + $0x1d8] sm:$0xff]  ;;  %v200_v62 = vpack.c.bf16 %v69_v54, %v68_v53  ;;  %v209_v0 = vpack.c.bf16 %v87_v59, %v86_v58 }
  0x35   :  { %522 = vmatprep.subr.bf16.mxu1 %v223_v43  ;;  %v216_v63 = vpack.c.bf16 %v101_v57, %v100_v55  ;;  %v70_v1 = vld [vmem:[#allocation5 + $0x50] sm:$0xff]  ;;  %v71_v2 = vld [vmem:[#allocation5 + $0x58] sm:$0xff]  ;;  %v225_v4 = vpack.c.bf16 %v119_v61, %v118_v60  ;;  %v88_v6 = vld [vmem:[#allocation5 + $0xe0] sm:$0xff] }
  0x36   :  { %501 = vmatpush3.bf16.msra.mxu0 %v199_v48  ;;  %v102_v3 = vld [vmem:[#allocation5 + $0x150] sm:$0xff]  ;;  %v103_v5 = vld [vmem:[#allocation5 + $0x158] sm:$0xff]  ;;  %v89_v7 = vld [vmem:[#allocation5 + $0xe8] sm:$0xff]  ;;  %v201_v10 = vpack.c.bf16 %v71_v2, %v70_v1 }
  0x37   :  { %502 = vmatprep.subr.bf16.mxu0 %v208_v52  ;;  %v120_v8 = vld [vmem:[#allocation5 + $0x1e0] sm:$0xff]  ;;  %v121_v9 = vld [vmem:[#allocation5 + $0x1e8] sm:$0xff]  ;;  %v217_v13 = vpack.c.bf16 %v103_v5, %v102_v3  ;;  %v210_v14 = vpack.c.bf16 %v89_v7, %v88_v6  ;;  %v90_v20 = vld [vmem:[#allocation5 + $0xf0] sm:$0xff] }
  0x38   :  { %523 = vmatpush3.bf16.msra.mxu1 %v215_v51  ;;  %v72_v11 = vld [vmem:[#allocation5 + $0x60] sm:$0xff]  ;;  %v73_v15 = vld [vmem:[#allocation5 + $0x68] sm:$0xff]  ;;  %v226_v19 = vpack.c.bf16 %v121_v9, %v120_v8  ;;  %v91_v21 = vld [vmem:[#allocation5 + $0xf8] sm:$0xff] }
  0x39   :  { %524 = vmatprep.subr.bf16.mxu1 %v224_v56  ;;  %v43_v12 = vld [vmem:[#allocation2 + $0x8] sm:$0xff]  ;;  %v105_v17 = vld [vmem:[#allocation5 + $0x168] sm:$0xff]  ;;  %v45_v22 = vld [vmem:[#allocation2 + $0x18] sm:$0xff]  ;;  %v202_v26 = vpack.c.bf16 %v73_v15, %v72_v11  ;;  %v211_v28 = vpack.c.bf16 %v91_v21, %v90_v20 }
  0x3a   :  { %503 = vmatpush3.bf16.msra.mxu0 %v200_v62  ;;  %v104_v16 = vld [vmem:[#allocation5 + $0x160] sm:$0xff]  ;;  %v52_v18 = vpack.c.bf16 %v43_v12, %v43_v12  ;;  %v122_v23 = vld [vmem:[#allocation5 + $0x1f0] sm:$0xff]  ;;  %v123_v24 = vld [vmem:[#allocation5 + $0x1f8] sm:$0xff]  ;;  %v54_v25 = vpack.c.bf16 %v45_v22, %v45_v22 }
  0x3b   :  { %504 = vmatprep.subr.bf16.mxu0 %v209_v0  ;;  %v218_v27 = vpack.c.bf16 %v105_v17, %v104_v16  ;;  %v74_v29 = vld [vmem:[#allocation5 + $0x70] sm:$0xff]  ;;  %v75_v30 = vld [vmem:[#allocation5 + $0x78] sm:$0xff]  ;;  %v227_v32 = vpack.c.bf16 %v123_v24, %v122_v23  ;;  %v140_v34 = vld [vmem:[#allocation5 + $0x280] sm:$0xff] }
  0x3c   :  { %525 = vmatpush3.bf16.msra.mxu1 %v216_v63  ;;  %307 = vmatprep.mubr.bf16.mxu0 %v52_v18  ;;  %v106_v31 = vld [vmem:[#allocation5 + $0x170] sm:$0xff]  ;;  %v107_v33 = vld [vmem:[#allocation5 + $0x178] sm:$0xff]  ;;  %v141_v35 = vld [vmem:[#allocation5 + $0x288] sm:$0xff]  ;;  %v203_v38 = vpack.c.bf16 %v75_v30, %v74_v29 }
  0x3d   :  { %526 = vmatprep.subr.bf16.mxu1 %v225_v4  ;;  %347 = vmatprep.mubr.bf16.mxu1 %v54_v25  ;;  %v172_v36 = vld [vmem:[#allocation5 + $0x380] sm:$0xff]  ;;  %v173_v37 = vld [vmem:[#allocation5 + $0x388] sm:$0xff]  ;;  %v42_v39 = vld [vmem:[#allocation2] sm:$0xff]  ;;  %v219_v41 = vpack.c.bf16 %v107_v33, %v106_v31  ;;  %v236_v42 = vpack.c.bf16 %v141_v35, %v140_v34 }
  0x3e   :  { %505 = vmatpush3.bf16.msra.mxu0 %v201_v10  ;;  %v124_v40 = vld [vmem:[#allocation5 + $0x200] sm:$0xff]  ;;  %v125_v43 = vld [vmem:[#allocation5 + $0x208] sm:$0xff]  ;;  %v252_v46 = vpack.c.bf16 %v173_v37, %v172_v36  ;;  %v142_v48 = vld [vmem:[#allocation5 + $0x290] sm:$0xff]  ;;  %v51_v50 = vpack.c.bf16 %v42_v39, %v42_v39 }
  0x3f   :  { %506 = vmatprep.subr.bf16.mxu0 %v210_v14  ;;  %v44_v44 = vld [vmem:[#allocation2 + $0x10] sm:$0xff]  ;;  %v156_v45 = vld [vmem:[#allocation5 + $0x300] sm:$0xff]  ;;  %v143_v49 = vld [vmem:[#allocation5 + $0x298] sm:$0xff]  ;;  %v228_v53 = vpack.c.bf16 %v125_v43, %v124_v40 }
  0x40   :  { %527 = vmatpush3.bf16.msra.mxu1 %v217_v13  ;;  %v157_v47 = vld [vmem:[#allocation5 + $0x308] sm:$0xff]  ;;  %v174_v51 = vld [vmem:[#allocation5 + $0x390] sm:$0xff]  ;;  %v175_v52 = vld [vmem:[#allocation5 + $0x398] sm:$0xff]  ;;  %v53_v54 = vpack.c.bf16 %v44_v44, %v44_v44  ;;  %v237_v56 = vpack.c.bf16 %v143_v49, %v142_v48 }
  0x41   :  { %528 = vmatprep.subr.bf16.mxu1 %v226_v19  ;;  %v244_v55 = vpack.c.bf16 %v157_v47, %v156_v45  ;;  %v126_v57 = vld [vmem:[#allocation5 + $0x210] sm:$0xff]  ;;  %v127_v58 = vld [vmem:[#allocation5 + $0x218] sm:$0xff]  ;;  %v253_v60 = vpack.c.bf16 %v175_v52, %v174_v51  ;;  %v144_v62 = vld [vmem:[#allocation5 + $0x2a0] sm:$0xff] }
  0x42   :  { %507 = vmatpush3.bf16.msra.mxu0 %v202_v26  ;;  %v158_v59 = vld [vmem:[#allocation5 + $0x310] sm:$0xff]  ;;  %v159_v61 = vld [vmem:[#allocation5 + $0x318] sm:$0xff]  ;;  %v145_v63 = vld [vmem:[#allocation5 + $0x2a8] sm:$0xff]  ;;  %v229_v2 = vpack.c.bf16 %v127_v58, %v126_v57 }
  0x43   :  { %508 = vmatprep.subr.bf16.mxu0 %v211_v28  ;;  %v176_v0 = vld [vmem:[#allocation5 + $0x3a0] sm:$0xff]  ;;  %v177_v1 = vld [vmem:[#allocation5 + $0x3a8] sm:$0xff]  ;;  %v245_v3 = vpack.c.bf16 %v159_v61, %v158_v59  ;;  %v238_v4 = vpack.c.bf16 %v145_v63, %v144_v62  ;;  %v146_v10 = vld [vmem:[#allocation5 + $0x2b0] sm:$0xff] }
  0x44   :  { %529 = vmatpush3.bf16.msra.mxu1 %v218_v27  ;;  %v128_v5 = vld [vmem:[#allocation5 + $0x220] sm:$0xff]  ;;  %v129_v6 = vld [vmem:[#allocation5 + $0x228] sm:$0xff]  ;;  %v254_v8 = vpack.c.bf16 %v177_v1, %v176_v0  ;;  %v147_v11 = vld [vmem:[#allocation5 + $0x2b8] sm:$0xff] }
  0x45   :  { %530 = vmatprep.subr.bf16.mxu1 %v227_v32  ;;  %v160_v7 = vld [vmem:[#allocation5 + $0x320] sm:$0xff]  ;;  %v161_v9 = vld [vmem:[#allocation5 + $0x328] sm:$0xff]  ;;  %v178_v12 = vld [vmem:[#allocation5 + $0x3b0] sm:$0xff]  ;;  %v230_v14 = vpack.c.bf16 %v129_v6, %v128_v5  ;;  %v239_v16 = vpack.c.bf16 %v147_v11, %v146_v10 }
  0x46   :  { %509 = vmatpush3.bf16.msra.mxu0 %v203_v38  ;;  %v179_v13 = vld [vmem:[#allocation5 + $0x3b8] sm:$0xff]  ;;  %v246_v15 = vpack.c.bf16 %v161_v9, %v160_v7  ;;  %v130_v17 = vld [vmem:[#allocation5 + $0x230] sm:$0xff]  ;;  %v148_v22 = vld [vmem:[#allocation5 + $0x2c0] sm:$0xff] }
  0x47   :  { %538 = vmatprep.subr.bf16.mxu0 %v236_v42  ;;  %v131_v18 = vld [vmem:[#allocation5 + $0x238] sm:$0xff]  ;;  %v162_v19 = vld [vmem:[#allocation5 + $0x330] sm:$0xff]  ;;  %v255_v20 = vpack.c.bf16 %v179_v13, %v178_v12  ;;  %v149_v23 = vld [vmem:[#allocation5 + $0x2c8] sm:$0xff] }
  0x48   :  { %531 = vmatpush3.bf16.msra.mxu1 %v219_v41  ;;  %v163_v21 = vld [vmem:[#allocation5 + $0x338] sm:$0xff]  ;;  %v180_v24 = vld [vmem:[#allocation5 + $0x3c0] sm:$0xff]  ;;  %v181_v25 = vld [vmem:[#allocation5 + $0x3c8] sm:$0xff]  ;;  %v231_v27 = vpack.c.bf16 %v131_v18, %v130_v17  ;;  %v240_v31 = vpack.c.bf16 %v149_v23, %v148_v22 }
  0x49   :  { %560 = vmatprep.subr.bf16.mxu1 %v252_v46  ;;  %308 = vmatmul.mubr.bf16.vlgmr.msra.gmra.mrb[0].mxu0 %v51_v50  ;;  %v47_v26 = vld [vmem:[#allocation2 + $0x28] sm:$0xff]  ;;  %v49_v29 = vld [vmem:[#allocation2 + $0x38] sm:$0xff]  ;;  %v247_v30 = vpack.c.bf16 %v163_v21, %v162_v19  ;;  %v133_v33 = vld [vmem:[#allocation5 + $0x248] sm:$0xff]  ;;  %v256_v36 = vpack.c.bf16 %v181_v25, %v180_v24  ;;  %v682_v19 = vmov 0.0  }
  0x4a   :  { %539 = vmatpush3.bf16.msra.mxu0 %v228_v53  ;;  %v56_v28 = vpack.c.bf16 %v47_v26, %v47_v26  ;;  %v132_v32 = vld [vmem:[#allocation5 + $0x240] sm:$0xff]  ;;  %v58_v35 = vpack.c.bf16 %v49_v29, %v49_v29  ;;  %v165_v37 = vld [vmem:[#allocation5 + $0x348] sm:$0xff]  ;;  %v150_v38 = vld [vmem:[#allocation5 + $0x2d0] sm:$0xff] }
  0x4b   :  { %348 = vmatmul.mubr.bf16.vlgmr.msra.gmra.mrb[0].mxu1 %v53_v54  ;;  %540 = vmatprep.subr.bf16.mxu0 %v237_v56  ;;  %v164_v34 = vld [vmem:[#allocation5 + $0x340] sm:$0xff]  ;;  %v151_v39 = vld [vmem:[#allocation5 + $0x2d8] sm:$0xff]  ;;  %v182_v40 = vld [vmem:[#allocation5 + $0x3d0] sm:$0xff]  ;;  %v232_v42 = vpack.c.bf16 %v133_v33, %v132_v32 }
  0x4c   :  { %561 = vmatpush3.bf16.msra.mxu1 %v244_v55  ;;  %387 = vmatprep.mubr.bf16.mxu0 %v56_v28  ;;  %v183_v41 = vld [vmem:[#allocation5 + $0x3d8] sm:$0xff]  ;;  %v248_v43 = vpack.c.bf16 %v165_v37, %v164_v34  ;;  %v241_v44 = vpack.c.bf16 %v151_v39, %v150_v38  ;;  %v134_v45 = vld [vmem:[#allocation5 + $0x250] sm:$0xff]  ;;  %v152_v50 = vld [vmem:[#allocation5 + $0x2e0] sm:$0xff] }
  0x4d   :  { %562 = vmatprep.subr.bf16.mxu1 %v253_v60  ;;  %427 = vmatprep.mubr.bf16.mxu1 %v58_v35  ;;  %v135_v46 = vld [vmem:[#allocation5 + $0x258] sm:$0xff]  ;;  %v166_v47 = vld [vmem:[#allocation5 + $0x350] sm:$0xff]  ;;  %v257_v48 = vpack.c.bf16 %v183_v41, %v182_v40  ;;  %v153_v51 = vld [vmem:[#allocation5 + $0x2e8] sm:$0xff] }
  0x4e   :  { %541 = vmatpush3.bf16.msra.mxu0 %v229_v2  ;;  %v167_v49 = vld [vmem:[#allocation5 + $0x358] sm:$0xff]  ;;  %v184_v52 = vld [vmem:[#allocation5 + $0x3e0] sm:$0xff]  ;;  %v185_v53 = vld [vmem:[#allocation5 + $0x3e8] sm:$0xff]  ;;  %v233_v54 = vpack.c.bf16 %v135_v46, %v134_v45  ;;  %v242_v56 = vpack.c.bf16 %v153_v51, %v152_v50 }
  0x4f   :  { %542 = vmatprep.subr.bf16.mxu0 %v238_v4  ;;  %v249_v55 = vpack.c.bf16 %v167_v49, %v166_v47  ;;  %v136_v57 = vld [vmem:[#allocation5 + $0x260] sm:$0xff]  ;;  %v137_v58 = vld [vmem:[#allocation5 + $0x268] sm:$0xff]  ;;  %v258_v60 = vpack.c.bf16 %v185_v53, %v184_v52  ;;  %v154_v62 = vld [vmem:[#allocation5 + $0x2f0] sm:$0xff] }
  0x50   :  { %563 = vmatpush3.bf16.msra.mxu1 %v245_v3  ;;  %v168_v59 = vld [vmem:[#allocation5 + $0x360] sm:$0xff]  ;;  %v169_v61 = vld [vmem:[#allocation5 + $0x368] sm:$0xff]  ;;  %v155_v63 = vld [vmem:[#allocation5 + $0x2f8] sm:$0xff]  ;;  %v234_v2 = vpack.c.bf16 %v137_v58, %v136_v57 }
  0x51   :  { %564 = vmatprep.subr.bf16.mxu1 %v254_v8  ;;  %v186_v0 = vld [vmem:[#allocation5 + $0x3f0] sm:$0xff]  ;;  %v187_v1 = vld [vmem:[#allocation5 + $0x3f8] sm:$0xff]  ;;  %v250_v3 = vpack.c.bf16 %v169_v61, %v168_v59  ;;  %v243_v4 = vpack.c.bf16 %v155_v63, %v154_v62  ;;  %v188_v13 = vld [vmem:[#allocation5 + $0x400] sm:$0xff] }
  0x52   :  { %543 = vmatpush3.bf16.msra.mxu0 %v230_v14  ;;  %v138_v5 = vld [vmem:[#allocation5 + $0x270] sm:$0xff]  ;;  %v139_v6 = vld [vmem:[#allocation5 + $0x278] sm:$0xff]  ;;  %v259_v7 = vpack.c.bf16 %v187_v1, %v186_v0  ;;  %v189_v14 = vld [vmem:[#allocation5 + $0x408] sm:$0xff] }
  0x53   :  { %544 = vmatprep.subr.bf16.mxu0 %v239_v16  ;;  %v170_v8 = vld [vmem:[#allocation5 + $0x370] sm:$0xff]  ;;  %v171_v9 = vld [vmem:[#allocation5 + $0x378] sm:$0xff]  ;;  %v235_v10 = vpack.c.bf16 %v139_v6, %v138_v5  ;;  %v260_v17 = vpack.c.bf16 %v189_v14, %v188_v13  ;;  %v192_v23 = vld [vmem:[#allocation5 + $0x420] sm:$0xff] }
  0x54   :  { %565 = vmatpush3.bf16.msra.mxu1 %v246_v15  ;;  %v46_v11 = vld [vmem:[#allocation2 + $0x20] sm:$0xff]  ;;  %v251_v12 = vpack.c.bf16 %v171_v9, %v170_v8  ;;  %v48_v15 = vld [vmem:[#allocation2 + $0x30] sm:$0xff]  ;;  %v194_v26 = vld [vmem:[#allocation5 + $0x430] sm:$0xff] }
  0x55   :  { %566 = vmatprep.subr.bf16.mxu1 %v255_v20  ;;  %v55_v16 = vpack.c.bf16 %v46_v11, %v46_v11  ;;  %v57_v18 = vpack.c.bf16 %v48_v15, %v48_v15  ;;  %v190_v20 = vld [vmem:[#allocation5 + $0x410] sm:$0xff]  ;;  %v191_v21 = vld [vmem:[#allocation5 + $0x418] sm:$0xff]  ;;  %v193_v24 = vld [vmem:[#allocation5 + $0x428] sm:$0xff] }
  0x56   :  { %545 = vmatpush3.bf16.msra.mxu0 %v231_v27  ;;  %v261_v22 = vpack.c.bf16 %v191_v21, %v190_v20  ;;  %v262_v25 = vpack.c.bf16 %v193_v24, %v192_v23  ;;  %v195_v27 = vld [vmem:[#allocation5 + $0x438] sm:$0xff] }
  0x57   :  { %546 = vmatprep.subr.bf16.mxu0 %v240_v31  ;;  %v263_v28 = vpack.c.bf16 %v195_v27, %v194_v26  ;;  %v50_v29 = vld [vmem:[#allocation2 + $0x40] sm:$0xff] }
  0x58   :  { %567 = vmatpush3.bf16.msra.mxu1 %v247_v30  ;;  %v59_v30 = vpack.c.bf16 %v50_v29, %v50_v29  ;;  %v492_v32 = vld [vmem:[%s753_s2] ss:$0 sm:$0xff]  ;;  %s684_s2 = smov [#allocation7]  }
  0x59   :  { %568 = vmatprep.subr.bf16.mxu1 %v256_v36  ;;  %s482_s11 = sshll.u32 %s684_s2, 4  ;;  %s483_s11 = int_to_ptr.vmem [resolvable:$true] %s482_s11 }
  0x5a   :  { %547 = vmatpush3.bf16.msra.mxu0 %v232_v42  ;;  %s650_s12 = scalar_lea.vmem %s483_s11, 128  ;;  %p655_p3 = scmp.lt.s32.totalorder %s483_s11, %s483_s11 }
  0x5b   :  { %548 = vmatprep.subr.bf16.mxu0 %v241_v44  ;;  %p651_p2 = scmp.ne.s32.totalorder %s483_s11, %s650_s12  ;;  %p656_p4 = scmp.lt.s32.totalorder %s650_s12, %s650_s12 }
  0x5c   :  { %569 = vmatpush3.bf16.msra.mxu1 %v248_v43 }
  0x5d   :  { %570 = vmatprep.subr.bf16.mxu1 %v257_v48  ;;  %p657_p5 = por %p656_p4, %p655_p3 }
  0x5e   :  { %549 = vmatpush3.bf16.msra.mxu0 %v233_v54 }
  0x5f   :  { %550 = vmatprep.subr.bf16.mxu0 %v242_v56  ;;  %p658_p6 = pnand %p657_p5, %p651_p2 }
  0x60   :  { %571 = vmatpush3.bf16.msra.mxu1 %v249_v55 }
  0x61   :  { %572 = vmatprep.subr.bf16.mxu1 %v258_v60 }
  0x62   :  { %551 = vmatpush3.bf16.msra.mxu0 %v234_v2 }
  0x63   :  { %552 = vmatprep.subr.bf16.mxu0 %v243_v4 }
  0x64   :  { %573 = vmatpush3.bf16.msra.mxu1 %v250_v3 }
  0x65   :  { %574 = vmatprep.subr.bf16.mxu1 %v259_v7 }
  0x66   :  { %553 = vmatpush3.bf16.msra.mxu0 %v235_v10 }
  0x67   :  { %587 = vmatprep.subr.bf16.mxu0 %v682_v19 }
  0x68   :  { %575 = vmatpush3.bf16.msra.mxu1 %v251_v12 }
  0x69   :  { %388 = vmatmul.mubr.bf16.vlgmr.msra.gmra.mrb[4].mxu0 %v55_v16 }
  0x6a   :  { %588 = vmatpush3.bf16.msra.mxu0 %v260_v17  ;;  %595 = vmatprep.mubr.msk.bf16.mxu0 %vm683_vm0, %v682_v19 }
  0x6b   :  { %428 = vmatmul.mubr.bf16.vlgmr.msra.gmra.mrb[4].mxu1 %v57_v18  ;;  %589 = vmatprep.subr.bf16.mxu0 %v682_v19 }
  0x6e   :  { %590 = vmatpush3.bf16.msra.mxu0 %v261_v22 }
  0x6f   :  { %591 = vmatprep.subr.bf16.mxu0 %v682_v19 }
  0x72   :  { %592 = vmatpush3.bf16.msra.mxu0 %v262_v25 }
  0x73   :  { %593 = vmatprep.subr.bf16.mxu0 %v682_v19 }
  0x76   :  { %594 = vmatpush3.bf16.msra.mxu0 %v263_v28 }
  0x79   :  { %596 = vmatmul.mubr.msk.bf16.vlgmr.msra.gmra.mrb[8].mxu0 %vm271_vm1, %v59_v30 }
 0x11c   :  { %v510_v31 = vpop.f32.mrb[0].mxu0 }
 0x11d   :  { %v511_v33 = vpop.f32.mrb[1].mxu0 }
 0x11e   :  { %v532_v34 = vpop.f32.mrb[0].mxu1  ;;  %v512_v35 = vadd.f32 %v511_v33, %v510_v31  ;;  %v513_v36 = vpop.f32.mrb[2].mxu0 }
 0x11f   :  { %v533_v37 = vpop.f32.mrb[1].mxu1  ;;  %v514_v38 = vpop.f32.mrb[3].mxu0 }
 0x120   :  { %v534_v39 = vadd.f32 %v533_v37, %v532_v34  ;;  %v535_v40 = vpop.f32.mrb[2].mxu1  ;;  %v310_v41 = vadd.f32 %v512_v35, %v492_v32 }
 0x121   :  { %v536_v42 = vpop.f32.mrb[3].mxu1 }
 0x122   :  { %v350_v43 = vadd.f32 %v534_v39, %v310_v41 }
 0x13c   :  { %v554_v44 = vpop.f32.mrb[4].mxu0 }
 0x13d   :  { %v555_v45 = vpop.f32.mrb[5].mxu0 }
 0x13e   :  { %v576_v46 = vpop.f32.mrb[4].mxu1  ;;  %v556_v47 = vadd.f32 %v555_v45, %v554_v44  ;;  %v557_v48 = vpop.f32.mrb[6].mxu0 }
 0x13f   :  { %v577_v49 = vpop.f32.mrb[5].mxu1  ;;  %v558_v50 = vpop.f32.mrb[7].mxu0 }
 0x140   :  { %v578_v51 = vadd.f32 %v577_v49, %v576_v46  ;;  %v579_v52 = vpop.f32.mrb[6].mxu1  ;;  %v390_v53 = vadd.f32 %v556_v47, %v350_v43 }
 0x141   :  { %v580_v54 = vpop.f32.mrb[7].mxu1 }
 0x142   :  { %v430_v55 = vadd.f32 %v578_v51, %v390_v53 }
 0x14c   :  { %v469_v56 = vpop.f32.mrb[8].mxu0 }
 0x14d   :  { %v470_v57 = vadd.f32 %v469_v56, %v430_v55  ;;  %v597_v58 = vpop.f32.mrb[9].mxu0 }
 0x14e   :  { %v472_v59 = vpop.f32.mrb[10].mxu0 }
 0x14f   :  { %475 = vst [vmem:[#allocation7] sm:$0xff] %v470_v57  ;;  %v598_v60 = vpop.f32.mrb[11].mxu0 }
 0x150   :  { %661 = shalt.err (!%p658_p6)
}
 0x151   :  { %s662_s15 = scalar_lea.hbm %s754_s3, 128 }
 0x152   :  { %p663_p7 = scmp.ne.s32.totalorder %s754_s3, %s662_s15  ;;  %p666_p8 = scmp.lt.u32.totalorder %s662_s15, %s754_s3 }
 0x154   :  { %p668_p9 = pnand %p666_p8, %p663_p7 }
 0x156   :  { %671 = shalt.err (!%p668_p9)
}
 0x157   :  { %485 = dma.vmem_to_hbm [thread:$0]  %s483_s11, 128, %s754_s3, [#allocation4]  }
 0x158   :  { %676 = dma.done.wait [#allocation4], 128  }
 0x159   :  { %677 = vsyncadd [#allocation4], 4294967168 }
 0x15a   :  { %489 = vsyncpa [#allocation3], 1 }
 0x15b   :  { %490 = vsyncpa [#allocation6], 1 }
 0x15c   :  { %491 = vsyncpa [#allocation4], 1 }

</bundles_post_ra>
